<compile_context>
chip_gen: v7x
topology: tpu7x:2x2x1
jax: 0.10.0
libtpu: 0.0.40
codegen_flags: <defaults>
</compile_context>

<pallas_src>
import math

import jax
import jax.numpy as jnp
from jax import lax
from jax.experimental import pallas as pl
from jax.experimental.pallas import tpu as pltpu

# ---------------- config (small shapes, consistent with the module) ----------
BATCH = 2
SEQ = 8
HIDDEN = 32
NUM_HEADS = 4
HEAD_DIM = HIDDEN // NUM_HEADS          # 8
NUM_KV_GROUPS = 2                        # dead code in the reference forward
CONTEXT_LENGTH = 16
ROPE_BASE = 10000.0


# ---------------- RoPE table precompute (plain JAX glue) ---------------------
def precompute_rope_params(head_dim, theta_base, context_length):
    assert head_dim % 2 == 0
    inv_freq = 1.0 / theta_base ** (
        jnp.arange(0, head_dim, 2)[: head_dim // 2].astype(jnp.float32) / head_dim
    )
    positions = jnp.arange(context_length).astype(jnp.float32)
    angles = positions[:, None] * inv_freq[None, :]          # (L, hd/2)
    angles = jnp.concatenate([angles, angles], axis=1)       # (L, hd)
    return jnp.cos(angles), jnp.sin(angles)


def rotate_half_matrix(num_heads, head_dim):
    """Block-diagonal (H,H) matrix R with per-head block [[0, I], [-I, 0]] such
    that x @ R == concat(-x2, x1) per head (the rotate-half op)."""
    half = head_dim // 2
    r = jnp.zeros((head_dim, head_dim), jnp.float32)
    r = r.at[half:, :half].set(-jnp.eye(half, dtype=jnp.float32))
    r = r.at[:half, half:].set(jnp.eye(half, dtype=jnp.float32))
    return jnp.kron(jnp.eye(num_heads, dtype=jnp.float32), r)


def fuse_weights(wq, wk, wv):
    """Host-side prep: pre-transpose (nn.Linear computes x @ W.T), fold the
    reference's `/(1/sqrt(hd))` == `*sqrt(hd)` scaling into Wq, and fold the
    rotate-half permutation into extra projection columns so RoPE becomes two
    elementwise FMAs in the kernel.  Result shape (H, 5H)."""
    sqrt_hd = math.sqrt(HEAD_DIM)
    R = rotate_half_matrix(NUM_HEADS, HEAD_DIM)
    wq_t = wq.T * sqrt_hd
    wk_t = wk.T
    wv_t = wv.T
    return jnp.concatenate([wq_t, wq_t @ R, wk_t, wk_t @ R, wv_t], axis=1)


# ---------------- Pallas kernel ----------------------------------------------
def gqa_attention_kernel(x_ref, wf_ref, wo_ref, cos_ref, sin_ref, bias_ref, o_ref):
    # x_ref: (BS, H) folded rows of this block (batch folded into sublanes).
    BS, H = x_ref.shape
    HD = HEAD_DIM

    # Single fused QKV(+rotated) projection: one MXU push instead of five.
    proj = jnp.dot(x_ref[...], wf_ref[...],
                   preferred_element_type=jnp.float32)        # (BS, 5H)

    cos = cos_ref[...]                                        # (BS, H) per-head tiled
    sin = sin_ref[...]

    # RoPE as two FMAs (rotation already folded into the projection columns);
    # sqrt(head_dim) score scale already folded into the q columns.
    q = proj[:, 0 * H:1 * H] * cos + proj[:, 1 * H:2 * H] * sin
    k = proj[:, 2 * H:3 * H] * cos + proj[:, 3 * H:4 * H] * sin
    v = proj[:, 4 * H:5 * H]

    bias = bias_ref[...]                                      # (BS, BS) additive mask

    acc = jnp.zeros((BS, H), jnp.float32)
    for h in range(NUM_HEADS):                                # static unrolled
        lo, hi = h * HD, (h + 1) * HD
        qh = q[:, lo:hi]
        kh = k[:, lo:hi]
        vh = v[:, lo:hi]

        # q @ k^T without materializing a transpose (contract last dims).
        s = lax.dot_general(qh, kh, (((1,), (1,)), ((), ())),
                            preferred_element_type=jnp.float32) + bias

        m = jnp.max(s, axis=-1, keepdims=True)
        p = jnp.exp(s - m)
        denom = jnp.sum(p, axis=-1, keepdims=True)
        attn = p * pl.reciprocal(denom, approx=False)

        ctx = jnp.dot(attn, vh, preferred_element_type=jnp.float32)   # (BS, HD)
        # Sublane-aligned 8-row slice of Wo^T; accumulate (no lane concat).
        acc = acc + jnp.dot(ctx, wo_ref[lo:hi, :],
                            preferred_element_type=jnp.float32)

    o_ref[...] = acc


# ---------------- wrapper ------------------------------------------------------
def _pick_batch_block(batch):
    """Fold the whole batch into one block on single-TC chips (v5e/v6e); keep a
    per-batch parallel grid on v7x so the 2 TensorCores each take one batch."""
    try:
        kind = jax.devices()[0].device_kind.lower()
    except Exception:
        kind = ""
    if batch > 1 and ("v7" in kind or "7x" in kind):
        return 1
    return batch


def gqa_attention(x, w_fused, wo_t, cos_hd, sin_hd, *, batch_block=None):
    B, S, H = x.shape
    if batch_block is None:
        batch_block = _pick_batch_block(B)
    assert B % batch_block == 0
    bs_block = batch_block * S
    n_blocks = (B * S) // bs_block

    # Per-head tiled RoPE tables (shared by every grid step; row b*S+s -> pos s).
    cos_t = jnp.tile(cos_hd, (batch_block, NUM_HEADS)).astype(jnp.float32)
    sin_t = jnp.tile(sin_hd, (batch_block, NUM_HEADS)).astype(jnp.float32)

    # Combined additive mask: causal triu(diag=1) within a batch element plus
    # -inf between different batch elements of the folded block.
    rows = jnp.arange(bs_block)
    b_of = rows // S
    s_of = rows % S
    allowed = (b_of[:, None] == b_of[None, :]) & (s_of[None, :] <= s_of[:, None])
    bias = jnp.where(allowed, 0.0, -jnp.inf).astype(jnp.float32)

    x2 = x.reshape(B * S, H)

    def full(shape):
        return pl.BlockSpec(shape, lambda b: (0, 0))

    out2 = pl.pallas_call(
        gqa_attention_kernel,
        out_shape=jax.ShapeDtypeStruct((B * S, H), jnp.float32),
        grid_spec=pltpu.PrefetchScalarGridSpec(
            num_scalar_prefetch=0,
            grid=(n_blocks,),
            in_specs=[
                pl.BlockSpec((bs_block, H), lambda b: (b, 0)),   # x (folded rows)
                full((H, 5 * H)),                                # fused projection
                full((H, H)),                                    # Wo^T
                full((bs_block, H)),                             # cos (tiled)
                full((bs_block, H)),                             # sin (tiled)
                full((bs_block, bs_block)),                      # additive mask
            ],
            out_specs=pl.BlockSpec((bs_block, H), lambda b: (b, 0)),
        ),
        compiler_params=pltpu.CompilerParams(
            dimension_semantics=("parallel",)),
    )(x2, w_fused, wo_t, cos_t, sin_t, bias)
    return out2.reshape(B, S, H)


# ---------------- pure-JAX reference (for verification) ----------------------
def ref_forward(x, wq, wk, wv, wo, cos, sin):
    B, S, H = x.shape
    q = x @ wq.T
    k = x @ wk.T
    v = x @ wv.T
    q = q.reshape(B, S, NUM_HEADS, HEAD_DIM).transpose(0, 2, 1, 3)
    k = k.reshape(B, S, NUM_HEADS, HEAD_DIM).transpose(0, 2, 1, 3)
    v = v.reshape(B, S, NUM_HEADS, HEAD_DIM).transpose(0, 2, 1, 3)

    def rope4(t):
        x1 = t[..., : HEAD_DIM // 2]
        x2 = t[..., HEAD_DIM // 2:]
        rot = jnp.concatenate([-x2, x1], axis=-1)
        return t * cos[None, None] + rot * sin[None, None]

    q = rope4(q)
    k = rope4(k)
    scores = jnp.einsum("bhqd,bhkd->bhqk", q, k) / (1.0 / math.sqrt(HEAD_DIM))
    causal = jnp.triu(jnp.ones((S, S), dtype=bool), k=1)
    scores = jnp.where(causal[None, None], -jnp.inf, scores)
    attn = jax.nn.softmax(scores, axis=-1)
    ctx = jnp.einsum("bhqk,bhkd->bhqd", attn, v).transpose(0, 2, 1, 3)
    ctx = ctx.reshape(B, S, H)
    return ctx @ wo.T


# ---------------- main --------------------------------------------------------
if __name__ == "__main__":
    key = jax.random.PRNGKey(0)
    kx, kq, kk, kv, ko = jax.random.split(key, 5)

    x = jax.random.normal(kx, (BATCH, SEQ, HIDDEN), dtype=jnp.float32)

    # nn.Linear weights are (out, in); the layer computes x @ W.T.
    scale = 1.0 / math.sqrt(HIDDEN)
    wq = jax.random.uniform(kq, (HIDDEN, HIDDEN), jnp.float32, -scale, scale)
    wk = jax.random.uniform(kk, (HIDDEN, HIDDEN), jnp.float32, -scale, scale)
    wv = jax.random.uniform(kv, (HIDDEN, HIDDEN), jnp.float32, -scale, scale)
    wo = jax.random.uniform(ko, (HIDDEN, HIDDEN), jnp.float32, -scale, scale)

    cos_full, sin_full = precompute_rope_params(HEAD_DIM, ROPE_BASE, CONTEXT_LENGTH)
    cos = cos_full[:SEQ].astype(jnp.float32)   # (S, HD)
    sin = sin_full[:SEQ].astype(jnp.float32)

    w_fused = fuse_weights(wq, wk, wv)         # (H, 5H)
    wo_t = wo.T                                # (H, H)

    out = gqa_attention(x, w_fused, wo_t, cos, sin)
    out = jax.block_until_ready(out)

    expected = ref_forward(x, wq, wk, wv, wo, cos, sin)
    assert out.shape == (BATCH, SEQ, HIDDEN)
    err = jnp.max(jnp.abs(out - expected))
    assert jnp.allclose(out, expected, atol=2e-4, rtol=2e-4), f"max abs err {err}"

    print("KERNEL_OK")
</pallas_src>

<mosaic_0001>
module attributes {stable_mosaic.version = 11 : i64} {
  func.func @gqa_attention_kernel(%arg0: i32, %arg1: memref<16x32xf32, #tpu.memory_space<vmem>>, %arg2: memref<32x160xf32, #tpu.memory_space<vmem>>, %arg3: memref<32x32xf32, #tpu.memory_space<vmem>>, %arg4: memref<16x32xf32, #tpu.memory_space<vmem>>, %arg5: memref<16x32xf32, #tpu.memory_space<vmem>>, %arg6: memref<16x16xf32, #tpu.memory_space<vmem>>, %arg7: memref<16x32xf32, #tpu.memory_space<vmem>>) attributes {dimension_semantics = [#tpu.dimension_semantics<parallel>], iteration_bounds = array<i64: 1>, scalar_prefetch = 0 : i64, scratch_operands = 0 : i64, tpu.core_type = #tpu.core_type<tc>, window_params = [{transform_indices = @transform_0, window_bounds = array<i64: 16, 32>}, {pipeline_mode = #tpu.pipeline_mode<synchronous>, transform_indices = @transform_1, window_bounds = array<i64: 32, 160>}, {pipeline_mode = #tpu.pipeline_mode<synchronous>, transform_indices = @transform_2, window_bounds = array<i64: 32, 32>}, {pipeline_mode = #tpu.pipeline_mode<synchronous>, transform_indices = @transform_3, window_bounds = array<i64: 16, 32>}, {pipeline_mode = #tpu.pipeline_mode<synchronous>, transform_indices = @transform_4, window_bounds = array<i64: 16, 32>}, {pipeline_mode = #tpu.pipeline_mode<synchronous>, transform_indices = @transform_5, window_bounds = array<i64: 16, 16>}, {transform_indices = @transform_6, window_bounds = array<i64: 16, 32>}]} {
    %c0 = arith.constant 0 : index
    %c0_0 = arith.constant 0 : index
    %0 = vector.load %arg1[%c0, %c0_0] : memref<16x32xf32, #tpu.memory_space<vmem>>, vector<16x32xf32>
    %c0_1 = arith.constant 0 : index
    %c0_2 = arith.constant 0 : index
    %1 = vector.load %arg2[%c0_1, %c0_2] : memref<32x160xf32, #tpu.memory_space<vmem>>, vector<32x160xf32>
    %cst = arith.constant dense<0.000000e+00> : vector<16x160xf32>
    %2 = tpu.matmul %0, %1, %cst {dimension_numbers = #tpu.dot_dimension_numbers<[1], [0], [0], [1], [0, 0, 1, 1], [], []>} : vector<16x32xf32>, vector<32x160xf32>, vector<16x160xf32> -> vector<16x160xf32>
    %c0_3 = arith.constant 0 : index
    %c0_4 = arith.constant 0 : index
    %3 = vector.load %arg4[%c0_3, %c0_4] : memref<16x32xf32, #tpu.memory_space<vmem>>, vector<16x32xf32>
    %c0_5 = arith.constant 0 : index
    %c0_6 = arith.constant 0 : index
    %4 = vector.load %arg5[%c0_5, %c0_6] : memref<16x32xf32, #tpu.memory_space<vmem>>, vector<16x32xf32>
    %5 = vector.extract_strided_slice %2 {offsets = [0, 0], sizes = [16, 32], strides = [1, 1]} : vector<16x160xf32> to vector<16x32xf32>
    %6 = arith.mulf %5, %3 : vector<16x32xf32>
    %7 = vector.extract_strided_slice %2 {offsets = [0, 32], sizes = [16, 32], strides = [1, 1]} : vector<16x160xf32> to vector<16x32xf32>
    %8 = arith.mulf %7, %4 : vector<16x32xf32>
    %9 = arith.addf %6, %8 : vector<16x32xf32>
    %10 = vector.extract_strided_slice %2 {offsets = [0, 64], sizes = [16, 32], strides = [1, 1]} : vector<16x160xf32> to vector<16x32xf32>
    %11 = arith.mulf %10, %3 : vector<16x32xf32>
    %12 = vector.extract_strided_slice %2 {offsets = [0, 96], sizes = [16, 32], strides = [1, 1]} : vector<16x160xf32> to vector<16x32xf32>
    %13 = arith.mulf %12, %4 : vector<16x32xf32>
    %14 = arith.addf %11, %13 : vector<16x32xf32>
    %15 = vector.extract_strided_slice %2 {offsets = [0, 128], sizes = [16, 32], strides = [1, 1]} : vector<16x160xf32> to vector<16x32xf32>
    %c0_7 = arith.constant 0 : index
    %c0_8 = arith.constant 0 : index
    %16 = vector.load %arg6[%c0_7, %c0_8] : memref<16x16xf32, #tpu.memory_space<vmem>>, vector<16x16xf32>
    %cst_9 = arith.constant 0.000000e+00 : f32
    %17 = vector.broadcast %cst_9 : f32 to vector<16x32xf32>
    %18 = vector.extract_strided_slice %9 {offsets = [0, 0], sizes = [16, 8], strides = [1, 1]} : vector<16x32xf32> to vector<16x8xf32>
    %19 = vector.extract_strided_slice %14 {offsets = [0, 0], sizes = [16, 8], strides = [1, 1]} : vector<16x32xf32> to vector<16x8xf32>
    %20 = vector.extract_strided_slice %15 {offsets = [0, 0], sizes = [16, 8], strides = [1, 1]} : vector<16x32xf32> to vector<16x8xf32>
    %cst_10 = arith.constant dense<0.000000e+00> : vector<16x16xf32>
    %21 = tpu.matmul %18, %19, %cst_10 {dimension_numbers = #tpu.dot_dimension_numbers<[1], [1], [0], [0], [0, 0, 1, 0], [], []>} : vector<16x8xf32>, vector<16x8xf32>, vector<16x16xf32> -> vector<16x16xf32>
    %22 = arith.addf %21, %16 : vector<16x16xf32>
    %cst_11 = arith.constant dense<0xFF800000> : vector<16xf32>
    %23 = vector.multi_reduction <maximumf>, %22, %cst_11 [1] : vector<16x16xf32> to vector<16xf32>
    %24 = vector.shape_cast %23 : vector<16xf32> to vector<16x1xf32>
    %25 = vector.broadcast %24 : vector<16x1xf32> to vector<16x16xf32>
    %26 = arith.subf %22, %25 : vector<16x16xf32>
    %27 = math.exp %26 : vector<16x16xf32>
    %cst_12 = arith.constant dense<0.000000e+00> : vector<16xf32>
    %28 = vector.multi_reduction <add>, %27, %cst_12 [1] : vector<16x16xf32> to vector<16xf32>
    %29 = vector.shape_cast %28 : vector<16xf32> to vector<16x1xf32>
    %30 = tpu.reciprocal %29 : vector<16x1xf32> -> vector<16x1xf32>
    %31 = vector.broadcast %30 : vector<16x1xf32> to vector<16x16xf32>
    %32 = arith.mulf %27, %31 : vector<16x16xf32>
    %cst_13 = arith.constant dense<0.000000e+00> : vector<16x8xf32>
    %33 = tpu.matmul %32, %20, %cst_13 {dimension_numbers = #tpu.dot_dimension_numbers<[1], [0], [0], [1], [0, 0, 1, 1], [], []>} : vector<16x16xf32>, vector<16x8xf32>, vector<16x8xf32> -> vector<16x8xf32>
    %c0_14 = arith.constant 0 : index
    %c0_15 = arith.constant 0 : index
    %34 = vector.load %arg3[%c0_14, %c0_15] : memref<32x32xf32, #tpu.memory_space<vmem>>, vector<8x32xf32>
    %cst_16 = arith.constant dense<0.000000e+00> : vector<16x32xf32>
    %35 = tpu.matmul %33, %34, %cst_16 {dimension_numbers = #tpu.dot_dimension_numbers<[1], [0], [0], [1], [0, 0, 1, 1], [], []>} : vector<16x8xf32>, vector<8x32xf32>, vector<16x32xf32> -> vector<16x32xf32>
    %36 = arith.addf %17, %35 : vector<16x32xf32>
    %37 = vector.extract_strided_slice %9 {offsets = [0, 8], sizes = [16, 8], strides = [1, 1]} : vector<16x32xf32> to vector<16x8xf32>
    %38 = vector.extract_strided_slice %14 {offsets = [0, 8], sizes = [16, 8], strides = [1, 1]} : vector<16x32xf32> to vector<16x8xf32>
    %39 = vector.extract_strided_slice %15 {offsets = [0, 8], sizes = [16, 8], strides = [1, 1]} : vector<16x32xf32> to vector<16x8xf32>
    %cst_17 = arith.constant dense<0.000000e+00> : vector<16x16xf32>
    %40 = tpu.matmul %37, %38, %cst_17 {dimension_numbers = #tpu.dot_dimension_numbers<[1], [1], [0], [0], [0, 0, 1, 0], [], []>} : vector<16x8xf32>, vector<16x8xf32>, vector<16x16xf32> -> vector<16x16xf32>
    %41 = arith.addf %40, %16 : vector<16x16xf32>
    %cst_18 = arith.constant dense<0xFF800000> : vector<16xf32>
    %42 = vector.multi_reduction <maximumf>, %41, %cst_18 [1] : vector<16x16xf32> to vector<16xf32>
    %43 = vector.shape_cast %42 : vector<16xf32> to vector<16x1xf32>
    %44 = vector.broadcast %43 : vector<16x1xf32> to vector<16x16xf32>
    %45 = arith.subf %41, %44 : vector<16x16xf32>
    %46 = math.exp %45 : vector<16x16xf32>
    %cst_19 = arith.constant dense<0.000000e+00> : vector<16xf32>
    %47 = vector.multi_reduction <add>, %46, %cst_19 [1] : vector<16x16xf32> to vector<16xf32>
    %48 = vector.shape_cast %47 : vector<16xf32> to vector<16x1xf32>
    %49 = tpu.reciprocal %48 : vector<16x1xf32> -> vector<16x1xf32>
    %50 = vector.broadcast %49 : vector<16x1xf32> to vector<16x16xf32>
    %51 = arith.mulf %46, %50 : vector<16x16xf32>
    %cst_20 = arith.constant dense<0.000000e+00> : vector<16x8xf32>
    %52 = tpu.matmul %51, %39, %cst_20 {dimension_numbers = #tpu.dot_dimension_numbers<[1], [0], [0], [1], [0, 0, 1, 1], [], []>} : vector<16x16xf32>, vector<16x8xf32>, vector<16x8xf32> -> vector<16x8xf32>
    %c8 = arith.constant 8 : index
    %c0_21 = arith.constant 0 : index
    %53 = vector.load %arg3[%c8, %c0_21] : memref<32x32xf32, #tpu.memory_space<vmem>>, vector<8x32xf32>
    %cst_22 = arith.constant dense<0.000000e+00> : vector<16x32xf32>
    %54 = tpu.matmul %52, %53, %cst_22 {dimension_numbers = #tpu.dot_dimension_numbers<[1], [0], [0], [1], [0, 0, 1, 1], [], []>} : vector<16x8xf32>, vector<8x32xf32>, vector<16x32xf32> -> vector<16x32xf32>
    %55 = arith.addf %36, %54 : vector<16x32xf32>
    %56 = vector.extract_strided_slice %9 {offsets = [0, 16], sizes = [16, 8], strides = [1, 1]} : vector<16x32xf32> to vector<16x8xf32>
    %57 = vector.extract_strided_slice %14 {offsets = [0, 16], sizes = [16, 8], strides = [1, 1]} : vector<16x32xf32> to vector<16x8xf32>
    %58 = vector.extract_strided_slice %15 {offsets = [0, 16], sizes = [16, 8], strides = [1, 1]} : vector<16x32xf32> to vector<16x8xf32>
    %cst_23 = arith.constant dense<0.000000e+00> : vector<16x16xf32>
    %59 = tpu.matmul %56, %57, %cst_23 {dimension_numbers = #tpu.dot_dimension_numbers<[1], [1], [0], [0], [0, 0, 1, 0], [], []>} : vector<16x8xf32>, vector<16x8xf32>, vector<16x16xf32> -> vector<16x16xf32>
    %60 = arith.addf %59, %16 : vector<16x16xf32>
    %cst_24 = arith.constant dense<0xFF800000> : vector<16xf32>
    %61 = vector.multi_reduction <maximumf>, %60, %cst_24 [1] : vector<16x16xf32> to vector<16xf32>
    %62 = vector.shape_cast %61 : vector<16xf32> to vector<16x1xf32>
    %63 = vector.broadcast %62 : vector<16x1xf32> to vector<16x16xf32>
    %64 = arith.subf %60, %63 : vector<16x16xf32>
    %65 = math.exp %64 : vector<16x16xf32>
    %cst_25 = arith.constant dense<0.000000e+00> : vector<16xf32>
    %66 = vector.multi_reduction <add>, %65, %cst_25 [1] : vector<16x16xf32> to vector<16xf32>
    %67 = vector.shape_cast %66 : vector<16xf32> to vector<16x1xf32>
    %68 = tpu.reciprocal %67 : vector<16x1xf32> -> vector<16x1xf32>
    %69 = vector.broadcast %68 : vector<16x1xf32> to vector<16x16xf32>
    %70 = arith.mulf %65, %69 : vector<16x16xf32>
    %cst_26 = arith.constant dense<0.000000e+00> : vector<16x8xf32>
    %71 = tpu.matmul %70, %58, %cst_26 {dimension_numbers = #tpu.dot_dimension_numbers<[1], [0], [0], [1], [0, 0, 1, 1], [], []>} : vector<16x16xf32>, vector<16x8xf32>, vector<16x8xf32> -> vector<16x8xf32>
    %c16 = arith.constant 16 : index
    %c0_27 = arith.constant 0 : index
    %72 = vector.load %arg3[%c16, %c0_27] : memref<32x32xf32, #tpu.memory_space<vmem>>, vector<8x32xf32>
    %cst_28 = arith.constant dense<0.000000e+00> : vector<16x32xf32>
    %73 = tpu.matmul %71, %72, %cst_28 {dimension_numbers = #tpu.dot_dimension_numbers<[1], [0], [0], [1], [0, 0, 1, 1], [], []>} : vector<16x8xf32>, vector<8x32xf32>, vector<16x32xf32> -> vector<16x32xf32>
    %74 = arith.addf %55, %73 : vector<16x32xf32>
    %75 = vector.extract_strided_slice %9 {offsets = [0, 24], sizes = [16, 8], strides = [1, 1]} : vector<16x32xf32> to vector<16x8xf32>
    %76 = vector.extract_strided_slice %14 {offsets = [0, 24], sizes = [16, 8], strides = [1, 1]} : vector<16x32xf32> to vector<16x8xf32>
    %77 = vector.extract_strided_slice %15 {offsets = [0, 24], sizes = [16, 8], strides = [1, 1]} : vector<16x32xf32> to vector<16x8xf32>
    %cst_29 = arith.constant dense<0.000000e+00> : vector<16x16xf32>
    %78 = tpu.matmul %75, %76, %cst_29 {dimension_numbers = #tpu.dot_dimension_numbers<[1], [1], [0], [0], [0, 0, 1, 0], [], []>} : vector<16x8xf32>, vector<16x8xf32>, vector<16x16xf32> -> vector<16x16xf32>
    %79 = arith.addf %78, %16 : vector<16x16xf32>
    %cst_30 = arith.constant dense<0xFF800000> : vector<16xf32>
    %80 = vector.multi_reduction <maximumf>, %79, %cst_30 [1] : vector<16x16xf32> to vector<16xf32>
    %81 = vector.shape_cast %80 : vector<16xf32> to vector<16x1xf32>
    %82 = vector.broadcast %81 : vector<16x1xf32> to vector<16x16xf32>
    %83 = arith.subf %79, %82 : vector<16x16xf32>
    %84 = math.exp %83 : vector<16x16xf32>
    %cst_31 = arith.constant dense<0.000000e+00> : vector<16xf32>
    %85 = vector.multi_reduction <add>, %84, %cst_31 [1] : vector<16x16xf32> to vector<16xf32>
    %86 = vector.shape_cast %85 : vector<16xf32> to vector<16x1xf32>
    %87 = tpu.reciprocal %86 : vector<16x1xf32> -> vector<16x1xf32>
    %88 = vector.broadcast %87 : vector<16x1xf32> to vector<16x16xf32>
    %89 = arith.mulf %84, %88 : vector<16x16xf32>
    %cst_32 = arith.constant dense<0.000000e+00> : vector<16x8xf32>
    %90 = tpu.matmul %89, %77, %cst_32 {dimension_numbers = #tpu.dot_dimension_numbers<[1], [0], [0], [1], [0, 0, 1, 1], [], []>} : vector<16x16xf32>, vector<16x8xf32>, vector<16x8xf32> -> vector<16x8xf32>
    %c24 = arith.constant 24 : index
    %c0_33 = arith.constant 0 : index
    %91 = vector.load %arg3[%c24, %c0_33] : memref<32x32xf32, #tpu.memory_space<vmem>>, vector<8x32xf32>
    %cst_34 = arith.constant dense<0.000000e+00> : vector<16x32xf32>
    %92 = tpu.matmul %90, %91, %cst_34 {dimension_numbers = #tpu.dot_dimension_numbers<[1], [0], [0], [1], [0, 0, 1, 1], [], []>} : vector<16x8xf32>, vector<8x32xf32>, vector<16x32xf32> -> vector<16x32xf32>
    %93 = arith.addf %74, %92 : vector<16x32xf32>
    %c0_35 = arith.constant 0 : index
    %c0_36 = arith.constant 0 : index
    %94 = vector.load %arg7[%c0_35, %c0_36] : memref<16x32xf32, #tpu.memory_space<vmem>>, vector<16x32xf32>
    tpu.vector_store %arg7[%c0_35, %c0_36], %93 {strides = array<i32>} : memref<16x32xf32, #tpu.memory_space<vmem>>, vector<16x32xf32>,
    return
  }
  func.func @transform_0(%arg0: i32) -> (i32, i32) {
    %c0_i32 = arith.constant 0 : i32
    %c0_i32_0 = arith.constant 0 : i32
    return %arg0, %c0_i32 : i32, i32
  }
  func.func @transform_1(%arg0: i32) -> (i32, i32) {
    %c0_i32 = arith.constant 0 : i32
    %c0_i32_0 = arith.constant 0 : i32
    %c0_i32_1 = arith.constant 0 : i32
    return %c0_i32, %c0_i32_0 : i32, i32
  }
  func.func @transform_2(%arg0: i32) -> (i32, i32) {
    %c0_i32 = arith.constant 0 : i32
    %c0_i32_0 = arith.constant 0 : i32
    %c0_i32_1 = arith.constant 0 : i32
    return %c0_i32, %c0_i32_0 : i32, i32
  }
  func.func @transform_3(%arg0: i32) -> (i32, i32) {
    %c0_i32 = arith.constant 0 : i32
    %c0_i32_0 = arith.constant 0 : i32
    %c0_i32_1 = arith.constant 0 : i32
    return %c0_i32, %c0_i32_0 : i32, i32
  }
  func.func @transform_4(%arg0: i32) -> (i32, i32) {
    %c0_i32 = arith.constant 0 : i32
    %c0_i32_0 = arith.constant 0 : i32
    %c0_i32_1 = arith.constant 0 : i32
    return %c0_i32, %c0_i32_0 : i32, i32
  }
  func.func @transform_5(%arg0: i32) -> (i32, i32) {
    %c0_i32 = arith.constant 0 : i32
    %c0_i32_0 = arith.constant 0 : i32
    %c0_i32_1 = arith.constant 0 : i32
    return %c0_i32, %c0_i32_0 : i32, i32
  }
  func.func @transform_6(%arg0: i32) -> (i32, i32) {
    %c0_i32 = arith.constant 0 : i32
    %c0_i32_0 = arith.constant 0 : i32
    return %arg0, %c0_i32 : i32, i32
  }
}

</mosaic_0001>

<bundles_post_ra>
// kernel: tpu_custom_call.1
= control target key start
LH: loop header
LB: loop body
LE: loop exit
PB: predicated region body
PF: predicated region fallthrough
CT: control target
= control target key end

     0   :  { %11 = vsyncpa [#allocation3], 0  ;;  %s2101_s0 = inlined_call_operand.hbm [shape: f32[16,32], index: 0, kind: input, shape index: {}]   ;;  %s2102_s1 = inlined_call_operand.hbm [shape: f32[32,160], index: 1, kind: input, shape index: {}]   ;;  %s2103_s2 = inlined_call_operand.hbm [shape: f32[32,32], index: 2, kind: input, shape index: {}]   ;;  %s2104_s3 = inlined_call_operand.hbm [shape: f32[16,32], index: 3, kind: input, shape index: {}]   ;;  %s2105_s4 = inlined_call_operand.hbm [shape: f32[16,32], index: 4, kind: input, shape index: {}]   ;;  %s2106_s5 = inlined_call_operand.vmem [shape: f32[16,16], index: 5, kind: input, shape index: {}]   ;;  %s2107_s6 = inlined_call_operand.hbm [shape: f32[16,32], index: 6, kind: output, shape index: {}]  }
   0x1   :  { %12 = vsyncpa [#allocation6], 0 }
   0x2   :  { %13 = vsyncpa [#allocation9], 0 }
   0x3   :  { %14 = vsyncpa [#allocation4], 0  ;;  %s1828_s21 = smov [#allocation5]   ;;  %s1688_s25 = scalar_lea.hbm %s2102_s1, 1024 }
   0x4   :  { %s32_s22 = sshll.u32 %s1828_s21, 4  ;;  %p1689_p0 = scmp.ne.s32.totalorder %s2102_s1, %s1688_s25  ;;  %s33_s22 = int_to_ptr.vmem [resolvable:$true] %s32_s22 }
   0x5   :  { %p1692_p1 = scmp.lt.u32.totalorder %s1688_s25, %s2102_s1 }
   0x7   :  { %p1694_p2 = pnand %p1692_p1, %p1689_p0 }
   0x9   :  { %1697 = shalt.err (!%p1694_p2)
}
   0xa   :  { %s1698_s30 = scalar_lea.vmem %s33_s22, 1024  ;;  %p1703_p4 = scmp.lt.s32.totalorder %s33_s22, %s33_s22 }
   0xb   :  { %p1699_p3 = scmp.ne.s32.totalorder %s33_s22, %s1698_s30  ;;  %p1704_p5 = scmp.lt.s32.totalorder %s1698_s30, %s1698_s30 }
   0xd   :  { %p1705_p6 = por %p1704_p5, %p1703_p4 }
   0xf   :  { %p1706_p7 = pnand %p1705_p6, %p1699_p3 }
  0x11   :  { %1709 = shalt.err (!%p1706_p7)
}
  0x12   :  { %s1829_s7 = smov 256   ;;  %s1830_s8 = smov 16  }
  0x13   :  { %38 = dma.hbm_to_vmem [thread:$0]  %s2102_s1, 1024, %s33_s22, [#allocation6], %s1829_s7, %s1829_s7, %s1830_s8  }
  0x14   :  { %s1831_s11 = smov [#allocation8]   ;;  %s1832_s13 = smov [#allocation2]  }
  0x15   :  { %s56_s12 = sshll.u32 %s1831_s11, 4  ;;  %s20_s14 = sshll.u32 %s1832_s13, 4  ;;  %s57_s12 = int_to_ptr.vmem [resolvable:$true] %s56_s12  ;;  %s21_s14 = int_to_ptr.vmem [resolvable:$true] %s20_s14 }
  0x16   :  { %s1710_s17 = scalar_lea.hbm %s2104_s3, 256 }
  0x17   :  { %p1711_p8 = scmp.ne.s32.totalorder %s2104_s3, %s1710_s17  ;;  %p1714_p9 = scmp.lt.u32.totalorder %s1710_s17, %s2104_s3 }
  0x19   :  { %p1716_p10 = pnand %p1714_p9, %p1711_p8 }
  0x1b   :  { %1719 = shalt.err (!%p1716_p10)
}
  0x1c   :  { %s1720_s1 = scalar_lea.vmem %s57_s12, 256  ;;  %p1725_p12 = scmp.lt.s32.totalorder %s57_s12, %s57_s12 }
  0x1d   :  { %p1721_p11 = scmp.ne.s32.totalorder %s57_s12, %s1720_s1  ;;  %p1726_p13 = scmp.lt.s32.totalorder %s1720_s1, %s1720_s1 }
  0x1f   :  { %p1727_p0 = por %p1726_p13, %p1725_p12 }
  0x21   :  { %p1728_p1 = pnand %p1727_p0, %p1721_p11 }
  0x23   :  { %1731 = shalt.err (!%p1728_p1)
}
  0x24   :  { %s1833_s22 = smov 128   ;;  %s1834_s23 = smov 8  }
  0x25   :  { %62 = dma.hbm_to_vmem [thread:$0]  %s2104_s3, 256, %s57_s12, [#allocation9], %s1833_s22, %s1833_s22, %s1834_s23  }
  0x26   :  { %s1732_s28 = scalar_lea.hbm %s2101_s0, 256 }
  0x27   :  { %p1733_p2 = scmp.ne.s32.totalorder %s2101_s0, %s1732_s28  ;;  %p1736_p3 = scmp.lt.u32.totalorder %s1732_s28, %s2101_s0 }
  0x29   :  { %p1738_p4 = pnand %p1736_p3, %p1733_p2 }
  0x2b   :  { %1741 = shalt.err (!%p1738_p4)
}
  0x2c   :  { %s1742_s9 = scalar_lea.vmem %s21_s14, 256  ;;  %p1747_p6 = scmp.lt.s32.totalorder %s21_s14, %s21_s14 }
  0x2d   :  { %p1743_p5 = scmp.ne.s32.totalorder %s21_s14, %s1742_s9  ;;  %p1748_p7 = scmp.lt.s32.totalorder %s1742_s9, %s1742_s9 }
  0x2f   :  { %p1749_p8 = por %p1748_p7, %p1747_p6 }
  0x31   :  { %p1750_p9 = pnand %p1749_p8, %p1743_p5 }
  0x33   :  { %1753 = shalt.err (!%p1750_p9)
}
  0x34   :  { %26 = dma.hbm_to_vmem [thread:$0]  %s2101_s0, 256, %s21_s14, [#allocation3], %s1833_s22, %s1833_s22, %s1834_s23  }
  0x35   :  { %s1835_s11 = smov [#allocation7]   ;;  %s1836_s13 = smov [#allocation10]  }
  0x36   :  { %s44_s12 = sshll.u32 %s1835_s11, 4  ;;  %s68_s15 = sshll.u32 %s1836_s13, 4  ;;  %s45_s12 = int_to_ptr.vmem [resolvable:$true] %s44_s12  ;;  %s69_s15 = int_to_ptr.vmem [resolvable:$true] %s68_s15 }
  0x37   :  { %s1754_s18 = scalar_lea.hbm %s2103_s2, 512 }
  0x38   :  { %p1755_p10 = scmp.ne.s32.totalorder %s2103_s2, %s1754_s18  ;;  %p1758_p11 = scmp.lt.u32.totalorder %s1754_s18, %s2103_s2 }
  0x3a   :  { %p1760_p12 = pnand %p1758_p11, %p1755_p10 }
  0x3c   :  { %1763 = shalt.err (!%p1760_p12)
}
  0x3d   :  { %s1764_s0 = scalar_lea.vmem %s45_s12, 512  ;;  %p1769_p0 = scmp.lt.s32.totalorder %s45_s12, %s45_s12 }
  0x3e   :  { %p1765_p13 = scmp.ne.s32.totalorder %s45_s12, %s1764_s0  ;;  %p1770_p1 = scmp.lt.s32.totalorder %s1764_s0, %s1764_s0 }
  0x40   :  { %p1771_p2 = por %p1770_p1, %p1769_p0 }
  0x42   :  { %p1772_p3 = pnand %p1771_p2, %p1765_p13 }
  0x44   :  { %1775 = shalt.err (!%p1772_p3)
}
  0x45   :  { %50 = dma.hbm_to_vmem [thread:$0]  %s2103_s2, 512, %s45_s12, [#allocation6], %s1833_s22, %s1833_s22, %s1834_s23  }
  0x46   :  { %s1776_s27 = scalar_lea.hbm %s2105_s4, 256 }
  0x47   :  { %p1777_p4 = scmp.ne.s32.totalorder %s2105_s4, %s1776_s27  ;;  %p1780_p5 = scmp.lt.u32.totalorder %s1776_s27, %s2105_s4 }
  0x49   :  { %p1782_p6 = pnand %p1780_p5, %p1777_p4 }
  0x4b   :  { %1785 = shalt.err (!%p1782_p6)
}
  0x4c   :  { %s1786_s8 = scalar_lea.vmem %s69_s15, 256  ;;  %p1791_p8 = scmp.lt.s32.totalorder %s69_s15, %s69_s15 }
  0x4d   :  { %p1787_p7 = scmp.ne.s32.totalorder %s69_s15, %s1786_s8  ;;  %p1792_p9 = scmp.lt.s32.totalorder %s1786_s8, %s1786_s8 }
  0x4f   :  { %p1793_p10 = por %p1792_p9, %p1791_p8 }
  0x51   :  { %p1794_p11 = pnand %p1793_p10, %p1787_p7 }
  0x53   :  { %1797 = shalt.err (!%p1794_p11)
}
  0x54   :  { %74 = dma.hbm_to_vmem [thread:$0]  %s2105_s4, 256, %s69_s15, [#allocation9], %s1833_s22, %s1833_s22, %s1834_s23  }
  0x55   :  { %1820 = dma.done.wait [#allocation3], 256  }
  0x56   :  { %1821 = vsyncadd [#allocation3], 4294967040 }
  0x57   :  { %1822 = dma.done.wait [#allocation6], 1536  }
  0x58   :  { %1823 = vsyncadd [#allocation6], 4294965760 }
  0x59   :  { %1824 = dma.done.wait [#allocation9], 512  }
  0x5a   :  { %1825 = vsyncadd [#allocation9], 4294966784  ;;  %v1837_v0 = vmov 0.0   ;;  %v95_v1 = vld [vmem:[#allocation5 + $0x8] sm:$0xff]  ;;  %v97_v2 = vld [vmem:[#allocation5 + $0x18] sm:$0xff]  ;;  %s1838_s4 = smov 96  }
  0x5b   :  { %173 = vmatprep.mubr.f32.mxu0 %v1837_v0  ;;  %v94_v3 = vld [vmem:[#allocation5] sm:$0xff]  ;;  %v1547_v4 = vpack.c.bf16 %v97_v2, %v95_v1  ;;  %v96_v5 = vld [vmem:[#allocation5 + $0x10] sm:$0xff]  ;;  %v99_v6 = vld [vmem:[#allocation5 + $0x28] sm:$0xff]  ;;  %s1839_s3 = smov 32   ;;  %vm102_vm0 = vcmask 261120   ;;  %s1840_s10 = smov 64  }
  0x5c   :  { %v101_v7 = vld [vmem:[#allocation5 + $0x38] sm:$0xff]  ;;  %v1549_v8 = vpack.c.bf16 %v96_v5, %v94_v3  ;;  %v98_v10 = vld [vmem:[#allocation5 + $0x20] sm:$0xff]  ;;  %v100_v11 = vld [vmem:[#allocation5 + $0x30] sm:$0xff]  ;;  %vm248_vm1 = vcmask 64512   ;;  %s1841_s11 = smov 56   ;;  %s1842_s12 = smov 120  }
  0x5d   :  { %v1551_v9 = vpack.c.bf16 %v101_v7, %v99_v6  ;;  %1548 = vmatprep.subr.bf16.mxu0 %v1547_v4  ;;  %v188_v12 = vld [vmem:[#allocation10] sm:$0xff]  ;;  %v1553_v13 = vpack.c.bf16 %v100_v11, %v98_v10  ;;  %v189_v14 = vld [vmem:[#allocation10 + $0x8] sm:$0xff]  ;;  %v186_v16 = vld [vmem:[#allocation8] sm:$0xff]  ;;  %vm334_vm3 = vcmask 130048   ;;  %s1844_s18 = smov 48   ;;  %s1845_s19 = smov 104  }
  0x5e   :  { %1550 = vmatpush1.bf16.msra.mxu0 %v1549_v8  ;;  %222 = vrot.lane.b32.xlu0 %v188_v12, %s1838_s4  ;;  %v92_v15 = vld [vmem:[#allocation2] sm:$0xff]  ;;  %v187_v17 = vld [vmem:[#allocation8 + $0x8] sm:$0xff]  ;;  %v93_v18 = vld [vmem:[#allocation2 + $0x8] sm:$0xff]  ;;  %s1846_s20 = smov 40   ;;  %s1847_s21 = smov [#allocation11]  }
  0x5f   :  { %1552 = vmatprep.subr.bf16.mxu0 %v1551_v9  ;;  %194 = vrot.lane.b32.xlu1 %v188_v12, %s1839_s3  ;;  %vm1984_vm2 = vmpackc.low %vm248_vm1, %vm248_vm1  ;;  %v2003_v59 = vld [vmem:[%s2106_s5 + $0x8] sm:$0xff]  ;;  %v2008_v60 = vld [vmem:[%s2106_s5] sm:$0xff]  ;;  %s1843_s5 = smov 112   ;;  %s1379_s1 = sshll.u32 %s1847_s21, 4  ;;  %s1380_s1 = int_to_ptr.vmem [resolvable:$true] %s1379_s1 }
  0x60   :  { %s1798_s0 = scalar_lea.vmem %s1380_s1, 256  ;;  %p1803_p13 = scmp.lt.s32.totalorder %s1380_s1, %s1380_s1 }
  0x61   :  { %p1799_p12 = scmp.ne.s32.totalorder %s1380_s1, %s1798_s0  ;;  %p1804_p0 = scmp.lt.s32.totalorder %s1798_s0, %s1798_s0 }
  0x62   :  { %1554 = vmatpush1.bf16.msra.mxu0 %v1553_v13  ;;  %224 = vrot.lane.b32.xlu0 %v189_v14, %s1838_s4 }
  0x63   :  { %196 = vrot.lane.b32.xlu1 %v189_v14, %s1839_s3  ;;  %p1805_p1 = por %p1804_p0, %p1803_p13 }
  0x65   :  { %1393 = vmatmul.mubr.msk.f32.vlgmr.msra.gmra.mrb[0].mxu0 %vm102_vm0, %v92_v15  ;;  %p1806_p2 = pnand %p1805_p1, %p1799_p12 }
  0x66   :  { %179 = vmatprep.mubr.f32.mxu0 %v1837_v0  ;;  %214 = vrot.lane.b32.xlu0 %v186_v16, %s1840_s10 }
  0x67   :  { %216 = vrot.lane.b32.xlu1 %v187_v17, %s1840_s10 }
  0x69   :  { %1394 = vmatmul.mubr.msk.f32.gmra.mrb[2].mxu0 %vm102_vm0, %v93_v18 }
  0xd0   :  { %v223_v19 = vpop.permute.xlu0 %222 }
  0xd1   :  { %v195_v23 = vpop.permute.xlu1 %194 }
  0xd4   :  { %v225_v24 = vpop.permute.xlu0 %224 }
  0xd5   :  { %v197_v31 = vpop.permute.xlu1 %196 }
  0xd8   :  { %v215_v33 = vpop.permute.xlu0 %214 }
  0xd9   :  { %v217_v34 = vpop.permute.xlu1 %216 }
 0x138   :  { %v175_v20 = vpop.f32.mrb[0].mxu0 }
 0x139   :  { %v177_v21 = vpop.f32.mrb[1].mxu0  ;;  %v228_v22 = vmul.f32 %v223_v19, %v175_v20  ;;  %v200_v27 = vmul.f32 %v195_v23, %v175_v20  ;;  %v220_v36 = vmul.f32 %v215_v33, %v175_v20  ;;  %v190_v37 = vmul.f32 %v186_v16, %v175_v20 }
 0x13b   :  { %232 = vrot.lane.b32.xlu0 %v228_v22, %s1838_s4 }
 0x13c   :  { %v181_v25 = vpop.f32.mrb[2].mxu0 }
 0x13d   :  { %v183_v26 = vpop.f32.mrb[3].mxu0  ;;  %v229_v28 = vmul.f32 %v225_v24, %v181_v25  ;;  %v201_v32 = vmul.f32 %v197_v31, %v181_v25  ;;  %v221_v38 = vmul.f32 %v217_v34, %v181_v25  ;;  %v191_v46 = vmul.f32 %v187_v17, %v181_v25 }
 0x13e   :  { %v1561_v29 = vpack.c.bf16 %v183_v26, %v177_v21  ;;  %v1962_v30 = vpack.i.bf16 %v183_v26, %v177_v21 }
 0x13f   :  { %204 = vrot.lane.b32.xlu0 %v200_v27, %s1838_s4  ;;  %234 = vrot.lane.b32.xlu1 %v229_v28, %s1838_s4 }
 0x143   :  { %206 = vrot.lane.b32.xlu1 %v201_v32, %s1838_s4 }
 0x1ad   :  { %v233_v35 = vpop.permute.xlu0 %232 }
 0x1ae   :  { %v238_v41 = vadd.f32 %v233_v35, %v220_v36 }
 0x1b1   :  { %v205_v39 = vpop.permute.xlu0 %204  ;;  %v235_v40 = vpop.permute.xlu1 %234 }
 0x1b2   :  { %v1967_v42 = vadd.f32 %v205_v39, %v190_v37  ;;  %v239_v43 = vadd.f32 %v235_v40, %v221_v38 }
 0x1b4   :  { %1475 = vmatprep.mubr.msk.f32.mxu1 %vm248_vm1, %v1967_v42  ;;  %v1971_v44 = vpack.i.bf16 %v239_v43, %v238_v41 }
 0x1b5   :  { %v207_v45 = vpop.permute.xlu1 %206 }
 0x1b6   :  { %1622 = vrot.lane.b32.xlu0 %v1971_v44, %s1840_s10  ;;  %1627 = vrot.lane.b32.xlu1 %v1971_v44, %s1841_s11  ;;  %v1976_v47 = vadd.f32 %v207_v45, %v191_v46 }
 0x1ba   :  { %439 = vrot.lane.b32.xlu0 %v1967_v42, %s1842_s12  ;;  %441 = vrot.lane.b32.xlu1 %v1976_v47, %s1842_s12 }
 0x228   :  { %v1623_v48 = vpop.permute.xlu0 %1622  ;;  %v1628_v49 = vpop.permute.xlu1 %1627 }
 0x229   :  { %v1625_v50 = vunpack.i.h.bf16 %v1623_v48  ;;  %v1624_v51 = vunpack.i.l.bf16 %v1623_v48  ;;  %v1630_v52 = vunpack.i.h.bf16 %v1628_v49  ;;  %v1629_v53 = vunpack.i.l.bf16 %v1628_v49 }
 0x22b   :  { %v1565_v55 = vpack.c.bf16 %v1630_v52, %v1629_v53  ;;  %v1555_v56 = vpack.c.bf16 %v1625_v50, %v1624_v51  ;;  %v438_v51 = vld [vmem:[#allocation7] sm:$0xff] }
 0x22c   :  { %v440_v57 = vpop.permute.xlu0 %439  ;;  %v442_v58 = vpop.permute.xlu1 %441 }
 0x22d   :  { %1557 = vmatprep.subr.msk.bf16.mxu1 %vm1984_vm2, %v1555_v56  ;;  %1567 = vmatprep.subr.msk.bf16.mxu0 %vm1984_vm2, %v1565_v55 }
 0x22e   :  { %1489 = vmatprep.mubr.msk.f32.mxu0 %vm248_vm1, %v440_v57  ;;  %1560 = vmatpush3.bf16.xpose.msk.msra.mxu1 %vm1984_vm2, %v1555_v56 }
 0x22f   :  { %1570 = vmatpush3.bf16.xpose.msk.msra.mxu0 %vm1984_vm2, %v1565_v55  ;;  %1562 = vmatprep.subr.bf16.mxu1 %v1561_v29 }
 0x230   :  { %1504 = vmatprep.subr.mxu0 %v438_v51 }
 0x235   :  { %1476 = vmatmul.mubr.msk.f32.vlgmr.msra.gmra.mrb[0].mxu1 %vm248_vm1, %v1976_v47 }
 0x236   :  { %1490 = vmatmul.mubr.msk.f32.vlgmr.msra.gmra.mrb[4].mxu0 %vm248_vm1, %v442_v58  ;;  %1564 = vmatpush3.bf16.msra.mxu1 %v1561_v29 }
 0x237   :  { %1505 = vmatpush3.msra.mxu0 %v438_v51 }
 0x308   :  { %v1477_v61 = vpop.f32.mrb[0].mxu1 }
 0x309   :  { %v331_v62 = vadd.f32 %v1477_v61, %v2003_v59  ;;  %v1491_v63 = vpop.f32.mrb[4].mxu0  ;;  %v325_v0 = vpop.f32.mrb[1].mxu1 }
 0x30a   :  { %v326_v1 = vadd.f32 %v325_v0, %v2008_v60  ;;  %v521_v2 = vpop.f32.mrb[5].mxu0  ;;  %v527_v6 = vadd.f32 %v1491_v63, %v2003_v59 }
 0x30b   :  { %v338_v3 = vsel %vm334_vm3, %v331_v62, -inf  ;;  %v522_v4 = vadd.f32 %v521_v2, %v2008_v60 }
 0x30c   :  { %339 = vmax.xlane.f32.xlu1 %v338_v3  ;;  %v335_v5 = vsel %vm334_vm3, %v326_v1, -inf  ;;  %v533_v8 = vsel %vm334_vm3, %v527_v6, -inf }
 0x30d   :  { %336 = vmax.xlane.f32.xlu0 %v335_v5  ;;  %v530_v7 = vsel %vm334_vm3, %v522_v4, -inf }
 0x311   :  { %531 = vmax.xlane.f32.xlu0 %v530_v7 }
 0x315   :  { %534 = vmax.xlane.f32.xlu0 %v533_v8 }
 0x399   :  { %v340_v9 = vpop.xlane.xlu1 %339 }
 0x39a   :  { %v342_v10 = vsub.f32 %v331_v62, %v340_v9  ;;  %v337_v11 = vpop.xlane.xlu0 %336 }
 0x39b   :  { %v341_v12 = vsub.f32 %v326_v1, %v337_v11 }
 0x39c   :  { %v345_v13 = vmul.f32 1.442695, %v342_v10 }
 0x39d   :  { %v343_v14 = vmul.f32 1.442695, %v341_v12 }
 0x39e   :  { %1656 = vpow2.f32 %v345_v13  ;;  %v532_v15 = vpop.xlane.xlu0 %531 }
 0x39f   :  { %1658 = vpow2.f32 %v343_v14  ;;  %v536_v16 = vsub.f32 %v522_v4, %v532_v15 }
 0x3a1   :  { %v538_v17 = vmul.f32 1.442695, %v536_v16 }
 0x3a2   :  { %v535_v18 = vpop.xlane.xlu0 %534 }
 0x3a3   :  { %1660 = vpow2.f32 %v538_v17  ;;  %v537_v19 = vsub.f32 %v527_v6, %v535_v18 }
 0x3a5   :  { %v540_v20 = vmul.f32 1.442695, %v537_v19 }
 0x3a7   :  { %1662 = vpow2.f32 %v540_v20 }
 0x3a8   :  { %v1657_v21 = vpop.eup %1656 }
 0x3a9   :  { %v1659_v22 = vpop.eup %1658  ;;  %v350_v23 = vsel %vm334_vm3, %v1657_v21, 0.0 }
 0x3aa   :  { %351 = vadd.xlane.f32.xlu0 %v350_v23  ;;  %v347_v24 = vsel %vm334_vm3, %v1659_v22, 0.0 }
 0x3ab   :  { %348 = vadd.xlane.f32.xlu1 %v347_v24 }
 0x3ad   :  { %v1661_v25 = vpop.eup %1660 }
 0x3ae   :  { %v542_v26 = vsel %vm334_vm3, %v1661_v25, 0.0 }
 0x3af   :  { %543 = vadd.xlane.f32.xlu1 %v542_v26 }
 0x3b1   :  { %v1663_v27 = vpop.eup %1662 }
 0x3b2   :  { %v545_v28 = vsel %vm334_vm3, %v1663_v27, 0.0 }
 0x3b3   :  { %546 = vadd.xlane.f32.xlu0 %v545_v28 }
 0x3c0   :  { %1632 = vrot.lane.b32.xlu1 %v1962_v30, %s1842_s12 }
 0x3c4   :  { %804 = vrot.lane.b32.xlu1 %v1967_v42, %s1843_s5 }
 0x3c8   :  { %806 = vrot.lane.b32.xlu1 %v1976_v47, %s1843_s5 }
 0x3c9   :  { %1637 = vrot.lane.b32.xlu0 %v1971_v44, %s1844_s18 }
 0x3cc   :  { %1088 = vrot.lane.b32.xlu1 %v1967_v42, %s1845_s19  ;;  %v641_v42 = vld [vmem:[#allocation7 + $0x8] sm:$0xff] }
 0x3cd   :  { %1642 = vrot.lane.b32.xlu0 %v1971_v44, %s1846_s20 }
 0x3d1   :  { %1090 = vrot.lane.b32.xlu0 %v1976_v47, %s1845_s19 }
 0x437   :  { %v352_v29 = vpop.xlane.xlu0 %351 }
 0x438   :  { %1664 = vrcp.f32 %v352_v29  ;;  %v349_v31 = vpop.xlane.xlu1 %348 }
 0x439   :  { %1666 = vrcp.f32 %v349_v31 }
 0x43c   :  { %v544_v32 = vpop.xlane.xlu1 %543 }
 0x43d   :  { %1668 = vrcp.f32 %v544_v32 }
 0x440   :  { %v1633_v33 = vpop.permute.xlu1 %1632  ;;  %v547_v34 = vpop.xlane.xlu0 %546 }
 0x441   :  { %v1635_v35 = vunpack.i.h.bf16 %v1633_v33  ;;  %v1634_v36 = vunpack.i.l.bf16 %v1633_v33  ;;  %1670 = vrcp.f32 %v547_v34 }
 0x442   :  { %v1665_v37 = vpop.eup %1664 }
 0x443   :  { %v1667_v38 = vpop.eup %1666  ;;  %v1571_v39 = vpack.c.bf16 %v1635_v35, %v1634_v36  ;;  %v356_v41 = vmul.f32 %v1665_v37, %v1657_v21 }
 0x444   :  { %v355_v40 = vmul.f32 %v1667_v38, %v1659_v22  ;;  %v1638_v44 = vpop.permute.xlu0 %1637  ;;  %v805_v56 = vpop.permute.xlu1 %804 }
 0x445   :  { %1572 = vmatprep.subr.bf16.mxu1 %v1571_v39  ;;  %v1640_v46 = vunpack.i.h.bf16 %v1638_v44  ;;  %v1639_v47 = vunpack.i.l.bf16 %v1638_v44 }
 0x446   :  { %1482 = vmatprep.mubr.msk.f32.mxu1 %vm334_vm3, %v355_v40 }
 0x447   :  { %v1669_v43 = vpop.eup %1668  ;;  %1483 = vmatmul.mubr.msk.f32.vlgmr.msra.gmra.mrb[2].mxu1 %vm334_vm3, %v356_v41  ;;  %v1575_v50 = vpack.c.bf16 %v1640_v46, %v1639_v47 }
 0x448   :  { %1574 = vmatpush3.bf16.msra.mxu1 %v1571_v39  ;;  %v550_v45 = vmul.f32 %v1669_v43, %v1661_v25  ;;  %v1643_v55 = vpop.permute.xlu0 %1642  ;;  %v807_v0 = vpop.permute.xlu1 %806 }
 0x449   :  { %1499 = vmatprep.subr.mxu1 %v641_v42  ;;  %v1645_v57 = vunpack.i.h.bf16 %v1643_v55  ;;  %v1644_v58 = vunpack.i.l.bf16 %v1643_v55 }
 0x44a   :  { %1496 = vmatprep.mubr.msk.f32.mxu1 %vm334_vm3, %v550_v45  ;;  %v1004_v45 = vld [vmem:[#allocation7 + $0x10] sm:$0xff] }
 0x44b   :  { %v1671_v48 = vpop.eup %1670  ;;  %v1585_v63 = vpack.c.bf16 %v1645_v57, %v1644_v58 }
 0x44c   :  { %v551_v49 = vmul.f32 %v1671_v48, %v1663_v27  ;;  %v1089_v1 = vpop.permute.xlu1 %1088  ;;  %v1091_v2 = vpop.permute.xlu0 %1090 }
 0x44e   :  { %1497 = vmatmul.mubr.msk.f32.vlgmr.msra.gmra.mrb[4].mxu1 %vm334_vm3, %v551_v49 }
 0x44f   :  { %1500 = vmatpush3.msra.mxu1 %v641_v42 }
 0x450   :  { %1577 = vmatprep.subr.msk.bf16.mxu1 %vm1984_vm2, %v1575_v50 }
 0x51a   :  { %v1484_v52 = vpop.f32.mrb[2].mxu1 }
 0x51b   :  { %v429_v53 = vpop.f32.mrb[3].mxu1 }
 0x51c   :  { %1506 = vmatprep.mubr.msk.f32.mxu0 %vm248_vm1, %v429_v53 }
 0x51d   :  { %1507 = vmatmul.mubr.msk.f32.vlgmr.msra.gmra.mrb[6].mxu0 %vm248_vm1, %v1484_v52 }
 0x521   :  { %v1498_v61 = vpop.f32.mrb[4].mxu1 }
 0x522   :  { %v632_v62 = vpop.f32.mrb[5].mxu1 }
 0x523   :  { %1501 = vmatprep.mubr.msk.f32.mxu1 %vm248_vm1, %v632_v62 }
 0x524   :  { %1502 = vmatmul.mubr.msk.f32.vlgmr.msra.gmra.mrb[6].mxu1 %vm248_vm1, %v1498_v61 }
 0x525   :  { %1580 = vmatpush3.bf16.xpose.msk.msra.mxu1 %vm1984_vm2, %v1575_v50  ;;  %1513 = vmatprep.mubr.msk.f32.mxu1 %vm248_vm1, %v805_v56 }
 0x526   :  { %1587 = vmatprep.subr.msk.bf16.mxu1 %vm1984_vm2, %v1585_v63 }
 0x52c   :  { %1514 = vmatmul.mubr.msk.f32.vlgmr.msra.gmra.mrb[8].mxu1 %vm248_vm1, %v807_v0 }
 0x52d   :  { %1590 = vmatpush3.bf16.xpose.msk.msra.mxu1 %vm1984_vm2, %v1585_v63  ;;  %1532 = vmatprep.mubr.msk.f32.mxu1 %vm248_vm1, %v1089_v1 }
 0x534   :  { %1533 = vmatmul.mubr.msk.f32.vlgmr.msra.gmra.mrb[10].mxu1 %vm248_vm1, %v1091_v2 }
 0x5f7   :  { %v2054_v3 = vpop.f32.mrb[6].mxu1 }
 0x5f8   :  { %v2056_v4 = vpop.f32.mrb[7].mxu1 }
 0x5ff   :  { %v1515_v5 = vpop.f32.mrb[8].mxu1 }
 0x600   :  { %v892_v6 = vadd.f32 %v1515_v5, %v2003_v59  ;;  %v886_v7 = vpop.f32.mrb[9].mxu1 }
 0x601   :  { %v887_v8 = vadd.f32 %v886_v7, %v2008_v60 }
 0x602   :  { %v898_v9 = vsel %vm334_vm3, %v892_v6, -inf }
 0x603   :  { %899 = vmax.xlane.f32.xlu0 %v898_v9  ;;  %v895_v54 = vsel %vm334_vm3, %v887_v8, -inf }
 0x604   :  { %896 = vmax.xlane.f32.xlu1 %v895_v54 }
 0x607   :  { %v1534_v10 = vpop.f32.mrb[10].mxu1 }
 0x608   :  { %v1170_v11 = vpop.f32.mrb[11].mxu1  ;;  %v1176_v23 = vadd.f32 %v1534_v10, %v2003_v59 }
 0x609   :  { %v1171_v20 = vadd.f32 %v1170_v11, %v2008_v60 }
 0x60a   :  { %v1182_v25 = vsel %vm334_vm3, %v1176_v23, -inf }
 0x60b   :  { %v1179_v24 = vsel %vm334_vm3, %v1171_v20, -inf }
 0x690   :  { %v900_v12 = vpop.xlane.xlu0 %899 }
 0x691   :  { %v902_v13 = vsub.f32 %v892_v6, %v900_v12  ;;  %v897_v14 = vpop.xlane.xlu1 %896 }
 0x692   :  { %v901_v15 = vsub.f32 %v887_v8, %v897_v14 }
 0x693   :  { %v905_v16 = vmul.f32 1.442695, %v902_v13 }
 0x694   :  { %v903_v17 = vmul.f32 1.442695, %v901_v15 }
 0x695   :  { %1672 = vpow2.f32 %v905_v16 }
 0x696   :  { %1674 = vpow2.f32 %v903_v17 }
 0x69f   :  { %v1673_v18 = vpop.eup %1672 }
 0x6a0   :  { %v1675_v19 = vpop.eup %1674  ;;  %v910_v21 = vsel %vm334_vm3, %v1673_v18, 0.0 }
 0x6a1   :  { %911 = vadd.xlane.f32.xlu1 %v910_v21  ;;  %v907_v22 = vsel %vm334_vm3, %v1675_v19, 0.0 }
 0x6a2   :  { %908 = vadd.xlane.f32.xlu0 %v907_v22 }
 0x6a5   :  { %1180 = vmax.xlane.f32.xlu1 %v1179_v24 }
 0x6a9   :  { %1183 = vmax.xlane.f32.xlu1 %v1182_v25 }
 0x6b8   :  { %1647 = vrot.lane.b32.xlu0 %v1962_v30, %s1843_s5 }
 0x72e   :  { %v912_v26 = vpop.xlane.xlu1 %911 }
 0x72f   :  { %1676 = vrcp.f32 %v912_v26  ;;  %v909_v60 = vpop.xlane.xlu0 %908 }
 0x730   :  { %1678 = vrcp.f32 %v909_v60 }
 0x732   :  { %v1181_v27 = vpop.xlane.xlu1 %1180 }
 0x733   :  { %v1648_v28 = vpop.permute.xlu0 %1647  ;;  %v1185_v32 = vsub.f32 %v1171_v20, %v1181_v27 }
 0x734   :  { %v1650_v29 = vunpack.i.h.bf16 %v1648_v28  ;;  %v1649_v31 = vunpack.i.l.bf16 %v1648_v28 }
 0x735   :  { %v1187_v36 = vmul.f32 1.442695, %v1185_v32 }
 0x736   :  { %v1581_v33 = vpack.c.bf16 %v1650_v29, %v1649_v31  ;;  %v1184_v59 = vpop.xlane.xlu1 %1183 }
 0x737   :  { %v1186_v34 = vsub.f32 %v1176_v23, %v1184_v59 }
 0x738   :  { %1582 = vmatprep.subr.bf16.mxu0 %v1581_v33 }
 0x739   :  { %v1677_v35 = vpop.eup %1676  ;;  %v1189_v37 = vmul.f32 1.442695, %v1186_v34  ;;  %1584 = vmatpush3.bf16.msra.mxu0 %v1581_v33 }
 0x73a   :  { %v1679_v38 = vpop.eup %1678  ;;  %v916_v40 = vmul.f32 %v1677_v35, %v1673_v18  ;;  %1523 = vmatprep.subr.mxu0 %v1004_v45 }
 0x73b   :  { %1680 = vpow2.f32 %v1189_v37  ;;  %v915_v39 = vmul.f32 %v1679_v38, %v1675_v19 }
 0x73c   :  { %1682 = vpow2.f32 %v1187_v36 }
 0x73d   :  { %1520 = vmatprep.mubr.msk.f32.mxu0 %vm334_vm3, %v915_v39 }
 0x73e   :  { %1521 = vmatmul.mubr.msk.f32.vlgmr.msra.gmra.mrb[8].mxu0 %vm334_vm3, %v916_v40 }
 0x73f   :  { %1524 = vmatpush3.msra.mxu0 %v1004_v45 }
 0x745   :  { %v1681_v41 = vpop.eup %1680 }
 0x746   :  { %v1194_v42 = vsel %vm334_vm3, %v1681_v41, 0.0  ;;  %v1683_v43 = vpop.eup %1682 }
 0x747   :  { %1195 = vadd.xlane.f32.xlu1 %v1194_v42  ;;  %v1191_v44 = vsel %vm334_vm3, %v1683_v43, 0.0 }
 0x74b   :  { %1192 = vadd.xlane.f32.xlu1 %v1191_v44 }
 0x75c   :  { %1652 = vrot.lane.b32.xlu1 %v1962_v30, %s1845_s19  ;;  %v1288_v30 = vld [vmem:[#allocation7 + $0x18] sm:$0xff] }
 0x7d4   :  { %v1196_v46 = vpop.xlane.xlu1 %1195 }
 0x7d8   :  { %v1193_v47 = vpop.xlane.xlu1 %1192 }
 0x7d9   :  { %1684 = vrcp.f32 %v1193_v47 }
 0x7da   :  { %1686 = vrcp.f32 %v1196_v46 }
 0x7dc   :  { %v1653_v48 = vpop.permute.xlu1 %1652 }
 0x7dd   :  { %v1655_v49 = vunpack.i.h.bf16 %v1653_v48  ;;  %v1654_v50 = vunpack.i.l.bf16 %v1653_v48 }
 0x7df   :  { %v1591_v51 = vpack.c.bf16 %v1655_v49, %v1654_v50 }
 0x7e1   :  { %1592 = vmatprep.subr.bf16.mxu0 %v1591_v51 }
 0x7e3   :  { %v1685_v52 = vpop.eup %1684 }
 0x7e4   :  { %v1687_v56 = vpop.eup %1686  ;;  %v1199_v57 = vmul.f32 %v1685_v52, %v1683_v43 }
 0x7e5   :  { %v1200_v58 = vmul.f32 %v1687_v56, %v1681_v41 }
 0x811   :  { %v1522_v53 = vpop.f32.mrb[8].mxu0 }
 0x812   :  { %v995_v55 = vpop.f32.mrb[9].mxu0 }
 0x813   :  { %1525 = vmatprep.mubr.msk.f32.mxu0 %vm248_vm1, %v995_v55 }
 0x814   :  { %1526 = vmatmul.mubr.msk.f32.vlgmr.msra.gmra.mrb[6].mxu0 %vm248_vm1, %v1522_v53 }
 0x815   :  { %1594 = vmatpush3.bf16.msra.mxu0 %v1591_v51  ;;  %1539 = vmatprep.mubr.msk.f32.mxu0 %vm334_vm3, %v1199_v57 }
 0x816   :  { %1542 = vmatprep.subr.mxu0 %v1288_v30 }
 0x818   :  { %1540 = vmatmul.mubr.msk.f32.vlgmr.msra.gmra.mrb[10].mxu0 %vm334_vm3, %v1200_v58 }
 0x819   :  { %1543 = vmatpush3.msra.mxu0 %v1288_v30 }
 0x8eb   :  { %v1541_v61 = vpop.f32.mrb[10].mxu0 }
 0x8ec   :  { %v1279_v62 = vpop.f32.mrb[11].mxu0 }
 0x8ed   :  { %1544 = vmatprep.mubr.msk.f32.mxu0 %vm248_vm1, %v1279_v62 }
 0x8ee   :  { %1545 = vmatmul.mubr.msk.f32.vlgmr.msra.gmra.mrb[6].mxu0 %vm248_vm1, %v1541_v61 }
 0x9c1   :  { %v1546_v63 = vpop.f32.mrb[6].mxu0 }
 0x9c2   :  { %v1595_v0 = vadd.f32 %v1546_v63, %v2054_v3  ;;  %v1361_v1 = vpop.f32.mrb[7].mxu0 }
 0x9c3   :  { %v1596_v2 = vadd.f32 %v1361_v1, %v2056_v4 }
 0x9c4   :  { %1373 = vst.msk [vmem:[#allocation11 + $0x8] sm:$0xff] %vm102_vm0, %v1595_v0 }
 0x9c5   :  { %1372 = vst.msk [vmem:[#allocation11] sm:$0xff] %vm102_vm0, %v1596_v2 }
 0x9c6   :  { %1809 = shalt.err (!%p1806_p2)
}
 0x9c7   :  { %s1810_s25 = scalar_lea.hbm %s2107_s6, 256 }
 0x9c8   :  { %p1811_p3 = scmp.ne.s32.totalorder %s2107_s6, %s1810_s25  ;;  %p1814_p4 = scmp.lt.u32.totalorder %s1810_s25, %s2107_s6 }
 0x9ca   :  { %p1816_p5 = pnand %p1814_p4, %p1811_p3 }
 0x9cc   :  { %1819 = shalt.err (!%p1816_p5)
}
 0x9cd   :  { %1385 = dma.vmem_to_hbm [thread:$0]  %s1380_s1, 256, %s2107_s6, [#allocation4], %s1833_s22, %s1833_s22, %s1834_s23  }
 0x9ce   :  { %1826 = dma.done.wait [#allocation4], 256  }
 0x9cf   :  { %1827 = vsyncadd [#allocation4], 4294967040 }
 0x9d0   :  { %1389 = vsyncpa [#allocation3], 1 }
 0x9d1   :  { %1390 = vsyncpa [#allocation6], 1 }
 0x9d2   :  { %1391 = vsyncpa [#allocation9], 1 }
 0x9d3   :  { %1392 = vsyncpa [#allocation4], 1 }

</bundles_post_ra>
